<compile_context>
chip_gen: v7x
topology: tpu7x:2x2x1
jax: 0.10.0
libtpu: 0.0.40
codegen_flags: <defaults>
</compile_context>

<pallas_src>
import functools

import jax
import jax.numpy as jnp
from jax.experimental import pallas as pl
from jax.experimental.pallas import tpu as pltpu


def _round_up(x, m):
    return -(-x // m) * m


# ---------------------------------------------------------------------------
# In-kernel OHKM finalize: per-batch top-k over joints of the per-joint loss.
# ---------------------------------------------------------------------------
def _ohkm_finalize(ss, wsq, out_ref, *, topk):
    """ss, wsq: (B_TILE, J) f32.  Writes (B_TILE, 1) mean-of-topk losses."""
    loss = wsq * ss                      # (0.5/HW) * w^2 * sum_hw(diff^2)
    bt, nj = loss.shape
    lane = jax.lax.broadcasted_iota(jnp.int32, (bt, nj), 1)
    cur = loss
    acc = jnp.zeros((bt, 1), jnp.float32)
    # Iterative top-k (k static & small -> unrolled).  Ties: exactly one
    # occurrence removed per round via the min matching lane index.
    for _ in range(topk):
        m = jnp.max(cur, axis=1, keepdims=True)          # XLU cross-lane max
        acc = acc + m
        idx = jnp.min(jnp.where(cur == m, lane, jnp.int32(nj)),
                      axis=1, keepdims=True)
        cur = jnp.where(lane == idx, jnp.float32(-jnp.inf), cur)
    out_ref[0] = acc * jnp.float32(1.0 / topk)           # (B_TILE, 1)


def _ohkm_kernel_single(pred_ref, gt_ref, wsq_ref, out_ref, *, topk):
    # Whole HW extent in one block: no accumulator, no pl.when phases.
    diff = pred_ref[...].astype(jnp.float32) - gt_ref[...].astype(jnp.float32)
    ss = jnp.sum(diff * diff, axis=-1)                   # (B_TILE, J)
    _ohkm_finalize(ss, wsq_ref[0], out_ref, topk=topk)


def _ohkm_kernel_chunked(pred_ref, gt_ref, wsq_ref, out_ref, acc_ref, *,
                         topk, hw_total, hw_tile):
    h = pl.program_id(1)

    @pl.when(h == 0)
    def _():
        acc_ref[...] = jnp.zeros_like(acc_ref)

    diff = pred_ref[...].astype(jnp.float32) - gt_ref[...].astype(jnp.float32)
    sq = diff * diff
    if hw_total % hw_tile != 0:
        # Ragged tail chunk: lanes past hw_total hold unspecified VMEM data;
        # select them to zero so Inf/NaN garbage cannot reach the accumulator.
        lane = jax.lax.broadcasted_iota(jnp.int32, sq.shape, 2)
        sq = jnp.where(h * hw_tile + lane < hw_total, sq, jnp.float32(0.0))
    acc_ref[...] += jnp.sum(sq, axis=-1)                 # (B_TILE, J)

    @pl.when(h == pl.num_programs(1) - 1)
    def _():
        _ohkm_finalize(acc_ref[...], wsq_ref[0], out_ref, topk=topk)


def joints_ohkm_mse_loss(output, target, target_weight,
                         use_target_weight=True, topk=8, *, _max_hw_tile=None):
    """Pallas implementation of JointsOHKMMSELoss.forward -> scalar loss."""
    B, J, H, W = output.shape
    HW = H * W
    assert 0 < topk <= J, "topk must be in [1, num_joints]"
    itemsize = jnp.dtype(output.dtype).itemsize

    # Heavy tensors stay unpadded & in native dtype: zero extra HBM traffic.
    pred = output.reshape(B, J, HW)
    gt = target.reshape(B, J, HW)

    if use_target_weight:
        w = target_weight.reshape(B, J).astype(jnp.float32)
    else:
        w = jnp.ones((B, J), jnp.float32)
    # 0.5 * w^2 * mean_hw(diff^2)  ==  0.5 * mean_hw((w*pred - w*gt)^2)
    wsq = (w * w) * jnp.float32(0.5 / HW)                # tiny (B, J) f32

    # ---- generation-aware tile sizing --------------------------------------
    try:
        vmem_cap = int(pltpu.get_tpu_info().vmem_capacity_bytes)
    except Exception:
        vmem_cap = 64 * 1024 * 1024                      # v7x per-core floor
    vmem_cap = max(vmem_cap, 32 * 1024 * 1024)
    # Pipeline footprint target: 2 inputs x 2 buffers x block must fit here.
    budget = min(int(vmem_cap * 0.45), 48 * 1024 * 1024)

    J_sub = _round_up(J, 8)                              # sublane footprint

    # Batch tile: keep grid[0] >= 2 whenever B >= 2 so the "parallel" axis can
    # shard across both v7x TensorCores; grow it for large B to cut grid steps.
    if B <= 1:
        bt = 1
    elif B <= 16:
        bt = -(-B // 2)
    else:
        bt = 8
        if 4 * 16 * J_sub * _round_up(HW, 128) * itemsize <= budget:
            bt = 16
    # Safety: shrink the batch tile if even a 512-lane HW chunk would not fit.
    while bt > 1 and 4 * bt * J_sub * 512 * itemsize > budget:
        bt = -(-bt // 2)
    grid_b = -(-B // bt)

    # HW tile: whole row if it fits (single pass), else 128-lane chunks.
    max_hw = budget // (4 * bt * J_sub * itemsize)
    max_hw = max(512, (max_hw // 128) * 128)
    if _max_hw_tile is not None:                         # test hook
        max_hw = max(128, (_max_hw_tile // 128) * 128)
    single_pass = HW <= max_hw
    if single_pass:
        hw_tile, n_h = HW, 1
    else:
        n_h = -(-HW // max_hw)
        hw_tile = _round_up(-(-HW // n_h), 128)          # balanced chunks
        n_h = -(-HW // hw_tile)

    # Only the tiny weight table gets batch-padded; reshaped so its batch tile
    # is a leading block dim (no (8,128) constraint, no in-kernel relayout).
    B_pad = grid_b * bt
    wsq = jnp.pad(wsq, ((0, B_pad - B), (0, 0))).reshape(grid_b, bt, J)

    block_bytes = bt * J_sub * _round_up(hw_tile, 128) * itemsize
    vmem_limit = min(int(vmem_cap * 0.9),
                     4 * block_bytes + (18 << 20))       # blocks + small bufs + margin

    if single_pass:
        kernel = functools.partial(_ohkm_kernel_single, topk=topk)
        grid = (grid_b,)
        in_specs = [
            pl.BlockSpec((bt, J, HW), lambda b: (b, 0, 0)),
            pl.BlockSpec((bt, J, HW), lambda b: (b, 0, 0)),
            pl.BlockSpec((1, bt, J), lambda b: (b, 0, 0)),
        ]
        out_specs = pl.BlockSpec((1, bt, 1), lambda b: (b, 0, 0))
        scratch_shapes = ()
        dim_sem = ("parallel",)
    else:
        kernel = functools.partial(_ohkm_kernel_chunked, topk=topk,
                                   hw_total=HW, hw_tile=hw_tile)
        grid = (grid_b, n_h)                             # reduction axis last
        in_specs = [
            pl.BlockSpec((bt, J, hw_tile), lambda b, h: (b, 0, h)),
            pl.BlockSpec((bt, J, hw_tile), lambda b, h: (b, 0, h)),
            pl.BlockSpec((1, bt, J), lambda b, h: (b, 0, 0)),
        ]
        out_specs = pl.BlockSpec((1, bt, 1), lambda b, h: (b, 0, 0))
        scratch_shapes = [pltpu.VMEM((bt, J), jnp.float32)]
        dim_sem = ("parallel", "arbitrary")

    per_batch = pl.pallas_call(
        kernel,
        out_shape=jax.ShapeDtypeStruct((grid_b, bt, 1), jnp.float32),
        grid_spec=pltpu.PrefetchScalarGridSpec(
            num_scalar_prefetch=0,
            grid=grid,
            in_specs=in_specs,
            out_specs=out_specs,
            scratch_shapes=scratch_shapes),
        compiler_params=pltpu.CompilerParams(
            dimension_semantics=dim_sem,
            vmem_limit_bytes=int(vmem_limit)),
    )(pred, gt, wsq)

    # Rows >= B (partial batch blocks) carry unspecified values; drop them.
    return jnp.mean(per_batch.reshape(-1)[:B])


def _reference(output, target, target_weight, use_target_weight=True, topk=8):
    """Pure-JAX reference mirroring the PyTorch module."""
    B, J, H, W = output.shape
    pred = output.reshape(B, J, -1).astype(jnp.float32)
    gt = target.reshape(B, J, -1).astype(jnp.float32)
    if use_target_weight:
        w = target_weight.reshape(B, J, 1).astype(jnp.float32)
    else:
        w = jnp.ones((B, J, 1), jnp.float32)
    l = 0.5 * jnp.mean((pred * w - gt * w) ** 2, axis=-1)   # (B, J)
    topv, _ = jax.lax.top_k(l, topk)
    return jnp.mean(jnp.sum(topv, axis=1) / topk)


if __name__ == "__main__":
    key = jax.random.PRNGKey(0)

    def run_case(B, J, H, W, use_w=True, topk=8, max_hw_tile=None, seed_off=0):
        k1, k2, k3 = jax.random.split(jax.random.fold_in(key, seed_off), 3)
        output = jax.random.normal(k1, (B, J, H, W), jnp.float32)
        target = jax.random.normal(k2, (B, J, H, W), jnp.float32)
        tw = jax.random.uniform(k3, (B, J, 1), jnp.float32)
        got = joints_ohkm_mse_loss(output, target, tw, use_target_weight=use_w,
                                   topk=topk, _max_hw_tile=max_hw_tile)
        jax.block_until_ready(got)
        ref = _reference(output, target, tw, use_target_weight=use_w, topk=topk)
        assert abs(float(got) - float(ref)) < 1e-4 * max(1.0, abs(float(ref))), \
            (B, J, H, W, float(got), float(ref))

    # Aligned shapes, single-pass kernel (batch=2, joints=16, 16x16 heatmaps).
    run_case(2, 16, 16, 16, use_w=True, topk=8)
    # Same shapes without target weights.
    run_case(2, 16, 16, 16, use_w=False, topk=8, seed_off=1)
    # Unaligned B / J / HW handled in-kernel (no wrapper padding of pred/gt).
    run_case(3, 17, 11, 13, use_w=True, topk=8, seed_off=2)
    # Force the chunked HW path with a ragged (masked) tail chunk.
    run_case(3, 17, 11, 13, use_w=True, topk=8, max_hw_tile=128, seed_off=3)

    print("KERNEL_OK")
</pallas_src>

<mosaic_0001>
module attributes {stable_mosaic.version = 11 : i64} {
  func.func @_ohkm_kernel_single(%arg0: i32, %arg1: memref<1x16x256xf32, #tpu.memory_space<vmem>>, %arg2: memref<1x16x256xf32, #tpu.memory_space<vmem>>, %arg3: memref<1x1x16xf32, #tpu.memory_space<vmem>>, %arg4: memref<1x1x1xf32, #tpu.memory_space<vmem>>) attributes {dimension_semantics = [#tpu.dimension_semantics<parallel>], iteration_bounds = array<i64: 2>, scalar_prefetch = 0 : i64, scratch_operands = 0 : i64, tpu.core_type = #tpu.core_type<tc>, window_params = [{transform_indices = @transform_0, window_bounds = array<i64: 1, 16, 256>}, {transform_indices = @transform_1, window_bounds = array<i64: 1, 16, 256>}, {transform_indices = @transform_2, window_bounds = array<i64: 1, 1, 16>}, {transform_indices = @transform_3, window_bounds = array<i64: 1, 1, 1>}]} {
    %c0 = arith.constant 0 : index
    %c0_0 = arith.constant 0 : index
    %c0_1 = arith.constant 0 : index
    %0 = vector.load %arg1[%c0, %c0_0, %c0_1] : memref<1x16x256xf32, #tpu.memory_space<vmem>>, vector<1x16x256xf32>
    %c0_2 = arith.constant 0 : index
    %c0_3 = arith.constant 0 : index
    %c0_4 = arith.constant 0 : index
    %1 = vector.load %arg2[%c0_2, %c0_3, %c0_4] : memref<1x16x256xf32, #tpu.memory_space<vmem>>, vector<1x16x256xf32>
    %2 = arith.subf %0, %1 : vector<1x16x256xf32>
    %3 = arith.mulf %2, %2 : vector<1x16x256xf32>
    %cst = arith.constant dense<0.000000e+00> : vector<1x16xf32>
    %4 = vector.multi_reduction <add>, %3, %cst [2] : vector<1x16x256xf32> to vector<1x16xf32>
    %c0_5 = arith.constant 0 : index
    %c0_6 = arith.constant 0 : index
    %c0_7 = arith.constant 0 : index
    %5 = vector.load %arg3[%c0_5, %c0_6, %c0_7] : memref<1x1x16xf32, #tpu.memory_space<vmem>>, vector<1x1x16xf32>
    %6 = vector.shape_cast %5 : vector<1x1x16xf32> to vector<1x16xf32>
    %7 = arith.mulf %6, %4 : vector<1x16xf32>
    %8 = tpu.iota {dimensions = array<i32: 1>} : vector<1x16xi32>
    %cst_8 = arith.constant 0.000000e+00 : f32
    %9 = vector.broadcast %cst_8 : f32 to vector<1x1xf32>
    %cst_9 = arith.constant dense<0xFF800000> : vector<1xf32>
    %10 = vector.multi_reduction <maximumf>, %7, %cst_9 [1] : vector<1x16xf32> to vector<1xf32>
    %11 = vector.shape_cast %10 : vector<1xf32> to vector<1x1xf32>
    %12 = arith.addf %9, %11 : vector<1x1xf32>
    %13 = vector.broadcast %11 : vector<1x1xf32> to vector<1x16xf32>
    %14 = arith.cmpf oeq, %7, %13 : vector<1x16xf32>
    %c16_i32 = arith.constant 16 : i32
    %15 = vector.broadcast %c16_i32 : i32 to vector<1x16xi32>
    %16 = arith.select %14, %8, %15 : vector<1x16xi1>, vector<1x16xi32>
    %cst_10 = arith.constant dense<2147483647> : vector<1xi32>
    %17 = vector.multi_reduction <minsi>, %16, %cst_10 [1] : vector<1x16xi32> to vector<1xi32>
    %18 = vector.shape_cast %17 : vector<1xi32> to vector<1x1xi32>
    %19 = vector.broadcast %18 : vector<1x1xi32> to vector<1x16xi32>
    %20 = arith.cmpi eq, %8, %19 : vector<1x16xi32>
    %cst_11 = arith.constant 0xFF800000 : f32
    %21 = vector.broadcast %cst_11 : f32 to vector<1x16xf32>
    %22 = arith.select %20, %21, %7 : vector<1x16xi1>, vector<1x16xf32>
    %cst_12 = arith.constant dense<0xFF800000> : vector<1xf32>
    %23 = vector.multi_reduction <maximumf>, %22, %cst_12 [1] : vector<1x16xf32> to vector<1xf32>
    %24 = vector.shape_cast %23 : vector<1xf32> to vector<1x1xf32>
    %25 = arith.addf %12, %24 : vector<1x1xf32>
    %26 = vector.broadcast %24 : vector<1x1xf32> to vector<1x16xf32>
    %27 = arith.cmpf oeq, %22, %26 : vector<1x16xf32>
    %c16_i32_13 = arith.constant 16 : i32
    %28 = vector.broadcast %c16_i32_13 : i32 to vector<1x16xi32>
    %29 = arith.select %27, %8, %28 : vector<1x16xi1>, vector<1x16xi32>
    %cst_14 = arith.constant dense<2147483647> : vector<1xi32>
    %30 = vector.multi_reduction <minsi>, %29, %cst_14 [1] : vector<1x16xi32> to vector<1xi32>
    %31 = vector.shape_cast %30 : vector<1xi32> to vector<1x1xi32>
    %32 = vector.broadcast %31 : vector<1x1xi32> to vector<1x16xi32>
    %33 = arith.cmpi eq, %8, %32 : vector<1x16xi32>
    %cst_15 = arith.constant 0xFF800000 : f32
    %34 = vector.broadcast %cst_15 : f32 to vector<1x16xf32>
    %35 = arith.select %33, %34, %22 : vector<1x16xi1>, vector<1x16xf32>
    %cst_16 = arith.constant dense<0xFF800000> : vector<1xf32>
    %36 = vector.multi_reduction <maximumf>, %35, %cst_16 [1] : vector<1x16xf32> to vector<1xf32>
    %37 = vector.shape_cast %36 : vector<1xf32> to vector<1x1xf32>
    %38 = arith.addf %25, %37 : vector<1x1xf32>
    %39 = vector.broadcast %37 : vector<1x1xf32> to vector<1x16xf32>
    %40 = arith.cmpf oeq, %35, %39 : vector<1x16xf32>
    %c16_i32_17 = arith.constant 16 : i32
    %41 = vector.broadcast %c16_i32_17 : i32 to vector<1x16xi32>
    %42 = arith.select %40, %8, %41 : vector<1x16xi1>, vector<1x16xi32>
    %cst_18 = arith.constant dense<2147483647> : vector<1xi32>
    %43 = vector.multi_reduction <minsi>, %42, %cst_18 [1] : vector<1x16xi32> to vector<1xi32>
    %44 = vector.shape_cast %43 : vector<1xi32> to vector<1x1xi32>
    %45 = vector.broadcast %44 : vector<1x1xi32> to vector<1x16xi32>
    %46 = arith.cmpi eq, %8, %45 : vector<1x16xi32>
    %cst_19 = arith.constant 0xFF800000 : f32
    %47 = vector.broadcast %cst_19 : f32 to vector<1x16xf32>
    %48 = arith.select %46, %47, %35 : vector<1x16xi1>, vector<1x16xf32>
    %cst_20 = arith.constant dense<0xFF800000> : vector<1xf32>
    %49 = vector.multi_reduction <maximumf>, %48, %cst_20 [1] : vector<1x16xf32> to vector<1xf32>
    %50 = vector.shape_cast %49 : vector<1xf32> to vector<1x1xf32>
    %51 = arith.addf %38, %50 : vector<1x1xf32>
    %52 = vector.broadcast %50 : vector<1x1xf32> to vector<1x16xf32>
    %53 = arith.cmpf oeq, %48, %52 : vector<1x16xf32>
    %c16_i32_21 = arith.constant 16 : i32
    %54 = vector.broadcast %c16_i32_21 : i32 to vector<1x16xi32>
    %55 = arith.select %53, %8, %54 : vector<1x16xi1>, vector<1x16xi32>
    %cst_22 = arith.constant dense<2147483647> : vector<1xi32>
    %56 = vector.multi_reduction <minsi>, %55, %cst_22 [1] : vector<1x16xi32> to vector<1xi32>
    %57 = vector.shape_cast %56 : vector<1xi32> to vector<1x1xi32>
    %58 = vector.broadcast %57 : vector<1x1xi32> to vector<1x16xi32>
    %59 = arith.cmpi eq, %8, %58 : vector<1x16xi32>
    %cst_23 = arith.constant 0xFF800000 : f32
    %60 = vector.broadcast %cst_23 : f32 to vector<1x16xf32>
    %61 = arith.select %59, %60, %48 : vector<1x16xi1>, vector<1x16xf32>
    %cst_24 = arith.constant dense<0xFF800000> : vector<1xf32>
    %62 = vector.multi_reduction <maximumf>, %61, %cst_24 [1] : vector<1x16xf32> to vector<1xf32>
    %63 = vector.shape_cast %62 : vector<1xf32> to vector<1x1xf32>
    %64 = arith.addf %51, %63 : vector<1x1xf32>
    %65 = vector.broadcast %63 : vector<1x1xf32> to vector<1x16xf32>
    %66 = arith.cmpf oeq, %61, %65 : vector<1x16xf32>
    %c16_i32_25 = arith.constant 16 : i32
    %67 = vector.broadcast %c16_i32_25 : i32 to vector<1x16xi32>
    %68 = arith.select %66, %8, %67 : vector<1x16xi1>, vector<1x16xi32>
    %cst_26 = arith.constant dense<2147483647> : vector<1xi32>
    %69 = vector.multi_reduction <minsi>, %68, %cst_26 [1] : vector<1x16xi32> to vector<1xi32>
    %70 = vector.shape_cast %69 : vector<1xi32> to vector<1x1xi32>
    %71 = vector.broadcast %70 : vector<1x1xi32> to vector<1x16xi32>
    %72 = arith.cmpi eq, %8, %71 : vector<1x16xi32>
    %cst_27 = arith.constant 0xFF800000 : f32
    %73 = vector.broadcast %cst_27 : f32 to vector<1x16xf32>
    %74 = arith.select %72, %73, %61 : vector<1x16xi1>, vector<1x16xf32>
    %cst_28 = arith.constant dense<0xFF800000> : vector<1xf32>
    %75 = vector.multi_reduction <maximumf>, %74, %cst_28 [1] : vector<1x16xf32> to vector<1xf32>
    %76 = vector.shape_cast %75 : vector<1xf32> to vector<1x1xf32>
    %77 = arith.addf %64, %76 : vector<1x1xf32>
    %78 = vector.broadcast %76 : vector<1x1xf32> to vector<1x16xf32>
    %79 = arith.cmpf oeq, %74, %78 : vector<1x16xf32>
    %c16_i32_29 = arith.constant 16 : i32
    %80 = vector.broadcast %c16_i32_29 : i32 to vector<1x16xi32>
    %81 = arith.select %79, %8, %80 : vector<1x16xi1>, vector<1x16xi32>
    %cst_30 = arith.constant dense<2147483647> : vector<1xi32>
    %82 = vector.multi_reduction <minsi>, %81, %cst_30 [1] : vector<1x16xi32> to vector<1xi32>
    %83 = vector.shape_cast %82 : vector<1xi32> to vector<1x1xi32>
    %84 = vector.broadcast %83 : vector<1x1xi32> to vector<1x16xi32>
    %85 = arith.cmpi eq, %8, %84 : vector<1x16xi32>
    %cst_31 = arith.constant 0xFF800000 : f32
    %86 = vector.broadcast %cst_31 : f32 to vector<1x16xf32>
    %87 = arith.select %85, %86, %74 : vector<1x16xi1>, vector<1x16xf32>
    %cst_32 = arith.constant dense<0xFF800000> : vector<1xf32>
    %88 = vector.multi_reduction <maximumf>, %87, %cst_32 [1] : vector<1x16xf32> to vector<1xf32>
    %89 = vector.shape_cast %88 : vector<1xf32> to vector<1x1xf32>
    %90 = arith.addf %77, %89 : vector<1x1xf32>
    %91 = vector.broadcast %89 : vector<1x1xf32> to vector<1x16xf32>
    %92 = arith.cmpf oeq, %87, %91 : vector<1x16xf32>
    %c16_i32_33 = arith.constant 16 : i32
    %93 = vector.broadcast %c16_i32_33 : i32 to vector<1x16xi32>
    %94 = arith.select %92, %8, %93 : vector<1x16xi1>, vector<1x16xi32>
    %cst_34 = arith.constant dense<2147483647> : vector<1xi32>
    %95 = vector.multi_reduction <minsi>, %94, %cst_34 [1] : vector<1x16xi32> to vector<1xi32>
    %96 = vector.shape_cast %95 : vector<1xi32> to vector<1x1xi32>
    %97 = vector.broadcast %96 : vector<1x1xi32> to vector<1x16xi32>
    %98 = arith.cmpi eq, %8, %97 : vector<1x16xi32>
    %cst_35 = arith.constant 0xFF800000 : f32
    %99 = vector.broadcast %cst_35 : f32 to vector<1x16xf32>
    %100 = arith.select %98, %99, %87 : vector<1x16xi1>, vector<1x16xf32>
    %cst_36 = arith.constant dense<0xFF800000> : vector<1xf32>
    %101 = vector.multi_reduction <maximumf>, %100, %cst_36 [1] : vector<1x16xf32> to vector<1xf32>
    %102 = vector.shape_cast %101 : vector<1xf32> to vector<1x1xf32>
    %103 = arith.addf %90, %102 : vector<1x1xf32>
    %cst_37 = arith.constant 1.250000e-01 : f32
    %104 = vector.broadcast %cst_37 : f32 to vector<1x1xf32>
    %105 = arith.mulf %103, %104 : vector<1x1xf32>
    %c0_38 = arith.constant 0 : index
    %c0_39 = arith.constant 0 : index
    %c0_40 = arith.constant 0 : index
    %106 = vector.load %arg4[%c0_38, %c0_39, %c0_40] : memref<1x1x1xf32, #tpu.memory_space<vmem>>, vector<1x1x1xf32>
    %107 = vector.shape_cast %106 : vector<1x1x1xf32> to vector<1x1xf32>
    %108 = vector.shape_cast %105 : vector<1x1xf32> to vector<1x1x1xf32>
    tpu.vector_store %arg4[%c0_38, %c0_39, %c0_40], %108 {strides = array<i32>} : memref<1x1x1xf32, #tpu.memory_space<vmem>>, vector<1x1x1xf32>,
    return
  }
  func.func @transform_0(%arg0: i32) -> (i32, i32, i32) {
    %c0_i32 = arith.constant 0 : i32
    %c0_i32_0 = arith.constant 0 : i32
    %c0_i32_1 = arith.constant 0 : i32
    return %arg0, %c0_i32, %c0_i32_0 : i32, i32, i32
  }
  func.func @transform_1(%arg0: i32) -> (i32, i32, i32) {
    %c0_i32 = arith.constant 0 : i32
    %c0_i32_0 = arith.constant 0 : i32
    %c0_i32_1 = arith.constant 0 : i32
    return %arg0, %c0_i32, %c0_i32_0 : i32, i32, i32
  }
  func.func @transform_2(%arg0: i32) -> (i32, i32, i32) {
    %c0_i32 = arith.constant 0 : i32
    %c0_i32_0 = arith.constant 0 : i32
    %c0_i32_1 = arith.constant 0 : i32
    return %arg0, %c0_i32, %c0_i32_0 : i32, i32, i32
  }
  func.func @transform_3(%arg0: i32) -> (i32, i32, i32) {
    %c0_i32 = arith.constant 0 : i32
    %c0_i32_0 = arith.constant 0 : i32
    %c0_i32_1 = arith.constant 0 : i32
    return %arg0, %c0_i32, %c0_i32_0 : i32, i32, i32
  }
}

</mosaic_0001>

<bundles_post_ra>
// kernel: tpu_custom_call.1
= control target key start
LH: loop header
LB: loop body
LE: loop exit
PB: predicated region body
PF: predicated region fallthrough
CT: control target
= control target key end

     0   :  { %8 = vsyncpa [#allocation3], 0  ;;  %s1156_s0 = inlined_call_operand.hbm [shape: f32[2,16,256], index: 0, kind: input, shape index: {}]   ;;  %s1157_s1 = inlined_call_operand.hbm [shape: f32[2,16,256], index: 1, kind: input, shape index: {}]   ;;  %s1158_s2 = inlined_call_operand.vmem [shape: f32[2,1,16], index: 2, kind: input, shape index: {}]   ;;  %s1159_s3 = inlined_call_operand.vmem [shape: f32[2,1,1], index: 3, kind: output, shape index: {}]  }
   0x1   :  { %10 = vsyncpa [#allocation3 + $0x1], 0 }
   0x2   :  { %11 = vsyncpa [#allocation5], 0 }
   0x3   :  { %13 = vsyncpa [#allocation5 + $0x1], 0  ;;  %s915_s12 = smov 0   ;;  %s917_s13 = smov 0  }
   0x4   :  { %s919_s14 = smov 0   ;;  %s921_s15 = smov 0  }
   0x5 LB: > { %s934_s16 = sadd.s32 4294967295, %s887_s15   ;;  %s937_s17 = sadd.s32 1, %s887_s15   ;;  %s887_s15 = sphi %s921_s15, %s1169_s15   ;;  %s883_s14 = sphi %s919_s14, %s1168_s14   ;;  %s879_s13 = sphi %s917_s13, %s1167_s13   ;;  %s875_s12 = sphi %s915_s12, %s1166_s12  }
   0x6   : > { %s23_s18 = ssub.s32 %s887_s15, %s937_s17  ;;  %s26_s19 = sadd.s32 1, %s883_s14 }
   0x7   : > { %p24_p0 = scmp.eq.s32.totalorder %s23_s18, 0  ;;  %p33_p1 = scmp.ne.s32.totalorder %s883_s14, %s879_s13 }
   0x8   : > { %p34_p2 = scmp.eq.s32.totalorder %s887_s15, 0  ;;  %p39_p3 = scmp.ne.s32.totalorder %s879_s13, %s875_s12 }
   0x9   : > { %s947_s20 = scalar_select %p24_p0, %s883_s14, %s26_s19  }
   0xa   : > { %p35_p4 = por %p34_p2, %p33_p1  ;;  %p40_p5 = scmp.eq.s32.totalorder %s934_s16, 0 }
   0xb   : > { %p750_p6 = scmp.lt.s32.totalorder %s887_s15, 2  ;;  %s956_s22 = sand.u32 1, %s883_s14  }
   0xc   : > { %p951_p7 = por %p40_p5, %p39_p3  ;;  %s726_s23 = sshll.u32 %s956_s22, 5 }
   0xd   : > { %s737_s24 = sshll.u32 %s887_s15, 9  ;;  %s145_s28 = scalar_lea.vmem [#allocation2], %s726_s23 }
   0xe   : > { %s1161_s21 = scalar_select %p951_p7, 1, 0 }
   0xf   : > { %s965_s27 = scalar_lea.hbm %s1156_s0, %s737_s24  ;;  %s152_s29 = sshll.u32 %s145_s28, 4  ;;  %s969_s29 = int_to_ptr.vmem [resolvable:$true] %s152_s29 }
  0x10   : > { %p971_p8 = pnand %p750_p6, %p35_p4  ;;  %s142_s4 = scalar_lea.sflag [#allocation3], %s956_s22 }
  0x11   : > { %s789_s5 = scalar_lea.hbm %s965_s27, 512  ;;  %s794_s8 = scalar_lea.hbm %s1156_s0, 1024 }
  0x12   : > { %p790_p10 = scmp.ne.s32.totalorder %s965_s27, %s789_s5  ;;  %p791_p11 = pneg %p971_p8 }
  0x13   : > { %p795_p0 = scmp.lt.u32.totalorder %s965_s27, %s1156_s0  ;;  %p796_p1 = scmp.lt.u32.totalorder %s794_s8, %s789_s5 }
  0x14   : > { %p792_p12 = pnand %p791_p11, %p790_p10  ;;  %p798_p3 = scmp.lt.u32.totalorder %s789_s5, %s965_s27 }
  0x15   : > { %p797_p2 = por %p796_p1, %p795_p0 }
  0x16   : > { %p793_p13 = pneg %p792_p12 }
  0x17   : > { %p799_p4 = por %p798_p3, %p797_p2 }
  0x19   : > { %p800_p5 = pnand %p799_p4, %p793_p13 }
  0x1b   : > { %803 = shalt.err (!%p800_p5)
}
  0x1c   : > { %s804_s11 = scalar_lea.vmem %s969_s29, 512  ;;  %s889_s12 = smov [#allocation2]  }
  0x1d   : > { %p805_p6 = scmp.ne.s32.totalorder %s969_s29, %s804_s11  ;;  %s809_s18 = sshll.u32 %s889_s12, 4  ;;  %s810_s18 = int_to_ptr.vmem [resolvable:$false] %s809_s18 }
  0x1e   : > { %s811_s19 = scalar_lea.vmem %s810_s18, 1024  ;;  %p812_p9 = scmp.lt.s32.totalorder %s969_s29, %s810_s18 }
  0x1f   : > { %p807_p10 = pnand %p805_p6, %p791_p11  ;;  %p813_p0 = scmp.lt.s32.totalorder %s811_s19, %s804_s11 }
  0x21   : > { %p808_p12 = pneg %p807_p10  ;;  %p814_p1 = por %p813_p0, %p812_p9 }
  0x23   : > { %p815_p2 = pnand %p814_p1, %p808_p12 }
  0x25   : > { %818 = shalt.err (!%p815_p2)
}
  0x26   : > { %s890_s25 = smov 256   ;;  %s891_s26 = smov 16  }
  0x27   : > { %746 = dma.hbm_to_vmem [thread:$0]  (!%p971_p8), %s965_s27, 512, %s969_s29, %s142_s4, %s890_s25, %s890_s25, %s891_s26  }
  0x28   : > { %p187_p9 = scmp.lt.s32.totalorder %s887_s15, 3  ;;  %s1013_s6 = scalar_lea.hbm %s1157_s1, %s737_s24 }
  0x29   : > { %p1163_p13 = scmp.ge.s32.totalorder %s887_s15, 1  ;;  %s166_s8 = scalar_lea.vmem [#allocation4], %s726_s23 }
  0x2a   : > { %s173_s9 = sshll.u32 %s166_s8, 4  ;;  %s163_s27 = scalar_lea.sflag [#allocation5], %s956_s22  ;;  %s1023_s9 = int_to_ptr.vmem [resolvable:$true] %s173_s9 }
  0x2b   : > { %p1017_p3 = pnand %p1163_p13, %p187_p9  ;;  %s819_s29 = scalar_lea.hbm %s1013_s6, 512 }
  0x2c   : > { %p820_p4 = scmp.ne.s32.totalorder %s1013_s6, %s819_s29  ;;  %s824_s4 = scalar_lea.hbm %s1157_s1, 1024 }
  0x2d   : > { %p825_p10 = scmp.lt.u32.totalorder %s1013_s6, %s1157_s1  ;;  %p826_p12 = scmp.lt.u32.totalorder %s824_s4, %s819_s29 }
  0x2e   : > { %p822_p5 = pnand %p820_p4, %p791_p11  ;;  %p828_p1 = scmp.lt.u32.totalorder %s819_s29, %s1013_s6 }
  0x2f   : > { %p827_p0 = por %p826_p12, %p825_p10 }
  0x30   : > { %p823_p6 = pneg %p822_p5 }
  0x31   : > { %p829_p2 = por %p828_p1, %p827_p0 }
  0x33   : > { %p830_p9 = pnand %p829_p2, %p823_p6 }
  0x35   : > { %833 = shalt.err (!%p830_p9)
}
  0x36   : > { %s834_s23 = scalar_lea.vmem %s1023_s9, 512  ;;  %s892_s12 = smov [#allocation4]  }
  0x37   : > { %p835_p13 = scmp.ne.s32.totalorder %s1023_s9, %s834_s23  ;;  %s839_s18 = sshll.u32 %s892_s12, 4  ;;  %s840_s18 = int_to_ptr.vmem [resolvable:$false] %s839_s18 }
  0x38   : > { %s841_s19 = scalar_lea.vmem %s840_s18, 1024  ;;  %p842_p7 = scmp.lt.s32.totalorder %s1023_s9, %s840_s18 }
  0x39   : > { %p837_p4 = pnand %p835_p13, %p791_p11  ;;  %p843_p10 = scmp.lt.s32.totalorder %s841_s19, %s834_s23 }
  0x3b   : > { %p838_p5 = pneg %p837_p4  ;;  %p844_p12 = por %p843_p10, %p842_p7 }
  0x3d   : > { %p845_p0 = pnand %p844_p12, %p838_p5 }
  0x3f   : > { %848 = shalt.err (!%p845_p0)
}
  0x40   : > { %749 = dma.hbm_to_vmem [thread:$0]  (!%p971_p8), %s1013_s6, 512, %s1023_s9, %s163_s27, %s890_s25, %s890_s25, %s891_s26  }
  0x41   : > { %191 = sbr.rel (%p1017_p3) target bundleno = 3623 (0xe27), region = 32  ;;  %s193_s28 = sand.u32 (!%p1017_p3), 1, %s879_s13  }
  0x42   : > { %s733_s5 = sshll.u32 (!%p1017_p3), %s193_s28, 5  ;;  %s194_s8 = scalar_lea.sflag (!%p1017_p3), [#allocation3], %s193_s28 }
  0x43   : > { %s197_s29 = scalar_lea.vmem (!%p1017_p3), [#allocation2], %s733_s5  ;;  %p1165_p7 = scmp.ne.s32.totalorder (!%p1017_p3), %s1161_s21, 0 }
  0x48   : > { %866 = dma.done.wait (%p1165_p7), %s194_s8, 512  }
  0x49   : > { %868 = vsyncadd (%p1165_p7), %s194_s8, 4294966784  ;;  %s203_s30 = scalar_lea.sflag [#allocation5], %s193_s28  ;;  %s206_s22 = scalar_lea.vmem [#allocation4], %s733_s5 }
  0x4a   : > { %870 = dma.done.wait (%p1165_p7), %s203_s30, 512  }
  0x4b   : > { %872 = vsyncadd (%p1165_p7), %s203_s30, 4294966784  ;;  %v241_v0 = vld [vmem:[%s197_s29] sm:$0xff]  ;;  %v242_v1 = vld [vmem:[%s197_s29 + $0x8] sm:$0xff]  ;;  %v893_v18 = vmov 0   ;;  %v266_v19 = vlaneseq  ;;  %v894_v20 = vmov 1966171168  }
  0x4c   : > { %v245_v2 = vld [vmem:[%s206_s22] sm:$0xff]  ;;  %v246_v3 = vld [vmem:[%s206_s22 + $0x8] sm:$0xff]  ;;  %v243_v5 = vld [vmem:[%s197_s29 + $0x10] sm:$0xff]  ;;  %787 = vset.pattern.permute.xlu1 %v893_v18  ;;  %788 = vset.pattern.permute.xlu0 %v893_v18  ;;  %v335_v21 = vunpack.c.l.s4 %v894_v20  ;;  %p235_p8 = scmp.lt.s32.totalorder %s934_s16, 1  ;;  %vm445_vm0 = vcmask 130112   ;;  %vm463_vm1 = vcmask 122880  }
  0x4d   : > { %v249_v4 = vsub.f32 %v241_v0, %v245_v2  ;;  %v244_v6 = vld [vmem:[%s197_s29 + $0x18] sm:$0xff]  ;;  %v250_v7 = vsub.f32 %v242_v1, %v246_v3  ;;  %v247_v8 = vld [vmem:[%s206_s22 + $0x10] sm:$0xff]  ;;  %v1065_v22 = vshrl.u32 %v266_v19, 7 }
  0x4e   : > { %v248_v9 = vld [vmem:[%s206_s22 + $0x18] sm:$0xff]  ;;  %v251_v11 = vsub.f32 %v243_v5, %v247_v8  ;;  %v336_v23 = vunpack.c.0.s8 %v335_v21  ;;  %s1171_s16 = smov (!%p235_p8, %s934_s16), 1 }
  0x4f   : > { %v253_v10 = vmul.f32 %v249_v4, %v249_v4  ;;  %v252_v12 = vsub.f32 %v244_v6, %v248_v9  ;;  %v254_v13 = vmul.f32 %v250_v7, %v250_v7  ;;  %v268_v24 = vsub.s32 0, %v1065_v22  ;;  %s237_s26 = scalar_lea.vmem %s1158_s2, %s1171_s16  ;;  %s240_s9 = scalar_lea.vmem %s1159_s3, %s1171_s16 }
  0x50   : > { %v255_v14 = vmul.f32 %v251_v11, %v251_v11  ;;  %v272_v25 = vsub.s32 1, %v1065_v22  ;;  %v276_v26 = vsub.s32 2, %v1065_v22  ;;  %v280_v27 = vsub.s32 3, %v1065_v22 }
  0x51   : > { %v256_v15 = vmul.f32 %v252_v12, %v252_v12  ;;  %v257_v16 = vadd.f32 %v254_v13, %v253_v10  ;;  %v284_v28 = vsub.s32 4, %v1065_v22  ;;  %v288_v29 = vsub.s32 5, %v1065_v22 }
  0x52   : > { %v292_v30 = vsub.s32 6, %v1065_v22  ;;  %v296_v31 = vsub.s32 7, %v1065_v22  ;;  %v339_v33 = vsub.s32 %v336_v23, %v1065_v22  ;;  %v1076_v13 = vand.u32 127, %v266_v19 }
  0x53   : > { %258 = vadd.xlane.f32.xlu0 %v257_v16  ;;  %v260_v17 = vadd.f32 %v256_v15, %v255_v14 }
  0x54   : > { %v440_v14 = vadd.s32 4294967288, %v1076_v13  ;;  %v438_v16 = vsub.s32 %v1076_v13, %v1065_v22 }
  0x57   : > { %261 = vadd.xlane.f32.xlu0 %v260_v17  ;;  %v443_v17 = vsub.s32 %v440_v14, %v1065_v22 }
  0xe0   : > { %v259_v32 = vpop.xlane.xlu0 %258 }
  0xe1   : > { %v269_v34 = vrot.slane %v259_v32, %v268_v24  ;;  %v273_v35 = vrot.slane %v259_v32, %v272_v25  ;;  %v277_v36 = vrot.slane %v259_v32, %v276_v26  ;;  %v281_v37 = vrot.slane %v259_v32, %v280_v27 }
  0xe2   : > { %v285_v38 = vrot.slane %v259_v32, %v284_v28  ;;  %v289_v39 = vrot.slane %v259_v32, %v288_v29  ;;  %v293_v40 = vrot.slane %v259_v32, %v292_v30  ;;  %v297_v41 = vrot.slane %v259_v32, %v296_v31 }
  0xe3   : > { %v330_v42 = vcombine.low %v269_v34, %v273_v35  ;;  %v331_v43 = vcombine.low %v277_v36, %v281_v37 }
  0xe4   : > { %v262_v44 = vpop.xlane.xlu0 %261  ;;  %v332_v45 = vcombine.low %v285_v38, %v289_v39  ;;  %v333_v46 = vcombine.low %v293_v40, %v297_v41 }
  0xe5   : > { %v340_v47 = vrot.slane %v330_v42, %v339_v33  ;;  %v347_v48 = vrot.slane %v331_v43, %v339_v33  ;;  %v301_v49 = vrot.slane %v262_v44, %v268_v24  ;;  %v305_v50 = vrot.slane %v262_v44, %v272_v25  ;;  %v263_v24 = vld [vmem:[%s237_s26] sm:$0x1] }
  0xe6   : > { %v354_v51 = vrot.slane %v332_v45, %v339_v33  ;;  %v361_v52 = vrot.slane %v333_v46, %v339_v33  ;;  %v309_v53 = vrot.slane %v262_v44, %v276_v26  ;;  %v313_v54 = vrot.slane %v262_v44, %v280_v27 }
  0xe7   : > { %v362_v55 = vcombine.low %v340_v47, %v347_v48  ;;  %v317_v56 = vrot.slane %v262_v44, %v284_v28  ;;  %v321_v57 = vrot.slane %v262_v44, %v288_v29  ;;  %v325_v58 = vrot.slane %v262_v44, %v292_v30 }
  0xe8   : > { %v363_v59 = vcombine.low %v354_v51, %v361_v52  ;;  %v329_v60 = vrot.slane %v262_v44, %v296_v31  ;;  %v379_v61 = vcombine.low %v301_v49, %v305_v50  ;;  %v380_v62 = vcombine.low %v309_v53, %v313_v54 }
  0xe9   : > { %v370_v63 = vrot.slane %v362_v55, %v339_v33  ;;  %v381_v0 = vcombine.low %v317_v56, %v321_v57 }
  0xea   : > { %v377_v1 = vrot.slane %v363_v59, %v339_v33  ;;  %v382_v2 = vcombine.low %v325_v58, %v329_v60  ;;  %v389_v3 = vrot.slane %v379_v61, %v339_v33  ;;  %v396_v4 = vrot.slane %v380_v62, %v339_v33 }
  0xeb   : > { %v403_v5 = vrot.slane %v381_v0, %v339_v33 }
  0xec   : > { %v378_v6 = vcombine.low %v370_v63, %v377_v1  ;;  %v410_v7 = vrot.slane %v382_v2, %v339_v33  ;;  %v411_v8 = vcombine.low %v389_v3, %v396_v4 }
  0xee   : > { %429 = vperm.xlu1 %787, %v378_v6   ;;  %v412_v9 = vcombine.low %v403_v5, %v410_v7  ;;  %v419_v10 = vrot.slane %v411_v8, %v339_v33 }
  0xf0   : > { %v426_v11 = vrot.slane %v412_v9, %v339_v33 }
  0xf2   : > { %v427_v12 = vcombine.low %v419_v10, %v426_v11 }
  0xf4   : > { %432 = vperm.xlu1 %787, %v427_v12  }
 0x16d   : > { %v430_v15 = vpop.permute.xlu1 %429 }
 0x16e   : > { %v439_v20 = vrot.slane %v430_v15, %v438_v16 }
 0x173   : > { %v433_v18 = vpop.permute.xlu1 %432 }
 0x174   : > { %v444_v21 = vrot.slane %v433_v18, %v443_v17 }
 0x176   : > { %v446_v19 = vsel %vm445_vm0, %v444_v21, %v439_v20 }
 0x177   : > { %v453_v23 = vrot.slane %v446_v19, %v339_v33 }
 0x179   : > { %v460_v25 = vrot.slane %v453_v23, %v339_v33 }
 0x17b   : > { %v462_v26 = vmul.f32 %v460_v25, %v263_v24 }
 0x17d   : > { %v464_v27 = vsel %vm463_vm1, %v462_v26, -inf }
 0x17e   : > { %465 = vmax.xlane.f32.xlu0 %v464_v27 }
 0x20b   : > { %v1091_v22 = vpop.xlane.xlu0 %465 }
 0x20c   : > { %vm468_vm2 = vcmp.eq.f32.partialorder %v462_v26, %v1091_v22 }
 0x20d   : > { %v469_v28 = vsel %vm468_vm2, %v1076_v13, 16 }
 0x20e   : > { %v470_v29 = vsel %vm463_vm1, %v469_v28, 2147483647 }
 0x20f   : > { %v472_v30 = vshra.s32 %v470_v29, 16  ;;  %v471_v32 = vand.u32 65535, %v470_v29 }
 0x211   : > { %v474_v31 = vcvt.s32.f32 %v472_v30  ;;  %v473_v35 = vcvt.s32.f32 %v471_v32 }
 0x213   : > { %475 = vmin.xlane.f32.xlu1 %v474_v31 }
 0x2a0   : > { %v476_v34 = vpop.xlane.xlu1 %475 }
 0x2a1   : > { %vm477_vm3 = vcmp.eq.f32.partialorder %v474_v31, %v476_v34  ;;  %v482_v36 = vcvt.f32.s32 %v476_v34 }
 0x2a2   : > { %v478_v33 = vsel %vm477_vm3, %v473_v35, inf }
 0x2a3   : > { %479 = vmin.xlane.f32.xlu0 %v478_v33  ;;  %v483_v38 = vshll.u32 %v482_v36, 16 }
 0x330   : > { %v480_v37 = vpop.xlane.xlu0 %479 }
 0x331   : > { %v481_v39 = vcvt.f32.s32 %v480_v37 }
 0x333   : > { %v484_v40 = vadd.s32 %v483_v38, %v481_v39 }
 0x335   : > { %vm485_vm4 = vcmp.eq.s32.totalorder %v1076_v13, %v484_v40 }
 0x336   : > { %v486_v41 = vsel %vm485_vm4, -inf, %v462_v26 }
 0x337   : > { %v487_v42 = vsel %vm463_vm1, %v486_v41, -inf }
 0x338   : > { %488 = vmax.xlane.f32.xlu0 %v487_v42 }
 0x3c5   : > { %v1098_v43 = vpop.xlane.xlu0 %488 }
 0x3c6   : > { %vm491_vm5 = vcmp.eq.f32.partialorder %v486_v41, %v1098_v43 }
 0x3c7   : > { %v492_v44 = vsel %vm491_vm5, %v1076_v13, 16 }
 0x3c8   : > { %v493_v45 = vsel %vm463_vm1, %v492_v44, 2147483647 }
 0x3c9   : > { %v495_v46 = vshra.s32 %v493_v45, 16  ;;  %v494_v48 = vand.u32 65535, %v493_v45 }
 0x3cb   : > { %v497_v47 = vcvt.s32.f32 %v495_v46  ;;  %v496_v50 = vcvt.s32.f32 %v494_v48 }
 0x3cd   : > { %498 = vmin.xlane.f32.xlu0 %v497_v47 }
 0x45a   : > { %v499_v49 = vpop.xlane.xlu0 %498 }
 0x45b   : > { %vm500_vm6 = vcmp.eq.f32.partialorder %v497_v47, %v499_v49  ;;  %v505_v52 = vcvt.f32.s32 %v499_v49 }
 0x45c   : > { %v501_v51 = vsel %vm500_vm6, %v496_v50, inf }
 0x45d   : > { %502 = vmin.xlane.f32.xlu0 %v501_v51  ;;  %v506_v54 = vshll.u32 %v505_v52, 16 }
 0x4ea   : > { %v503_v53 = vpop.xlane.xlu0 %502 }
 0x4eb   : > { %v504_v55 = vcvt.f32.s32 %v503_v53 }
 0x4ed   : > { %v507_v56 = vadd.s32 %v506_v54, %v504_v55 }
 0x4ef   : > { %vm508_vm7 = vcmp.eq.s32.totalorder %v1076_v13, %v507_v56 }
 0x4f0   : > { %v509_v57 = vsel %vm508_vm7, -inf, %v486_v41 }
 0x4f1   : > { %v510_v58 = vsel %vm463_vm1, %v509_v57, -inf }
 0x4f2   : > { %511 = vmax.xlane.f32.xlu0 %v510_v58 }
 0x57f   : > { %v1105_v59 = vpop.xlane.xlu0 %511 }
 0x580   : > { %vm514_vm8 = vcmp.eq.f32.partialorder %v509_v57, %v1105_v59 }
 0x581   : > { %v515_v60 = vsel %vm514_vm8, %v1076_v13, 16  ;;  %vm630_vm8 = vcmask 0  }
 0x582   : > { %v516_v61 = vsel %vm463_vm1, %v515_v60, 2147483647 }
 0x583   : > { %v518_v62 = vshra.s32 %v516_v61, 16  ;;  %v517_v0 = vand.u32 65535, %v516_v61 }
 0x585   : > { %v520_v63 = vcvt.s32.f32 %v518_v62  ;;  %v519_v2 = vcvt.s32.f32 %v517_v0 }
 0x587   : > { %521 = vmin.xlane.f32.xlu0 %v520_v63 }
 0x614   : > { %v522_v1 = vpop.xlane.xlu0 %521 }
 0x615   : > { %vm523_vm9 = vcmp.eq.f32.partialorder %v520_v63, %v522_v1  ;;  %v528_v4 = vcvt.f32.s32 %v522_v1 }
 0x616   : > { %v524_v3 = vsel %vm523_vm9, %v519_v2, inf }
 0x617   : > { %525 = vmin.xlane.f32.xlu0 %v524_v3  ;;  %v529_v6 = vshll.u32 %v528_v4, 16 }
 0x6a4   : > { %v526_v5 = vpop.xlane.xlu0 %525 }
 0x6a5   : > { %v527_v7 = vcvt.f32.s32 %v526_v5 }
 0x6a7   : > { %v530_v8 = vadd.s32 %v529_v6, %v527_v7 }
 0x6a9   : > { %vm531_vm10 = vcmp.eq.s32.totalorder %v1076_v13, %v530_v8 }
 0x6aa   : > { %v532_v9 = vsel %vm531_vm10, -inf, %v509_v57 }
 0x6ab   : > { %v533_v10 = vsel %vm463_vm1, %v532_v9, -inf }
 0x6ac   : > { %534 = vmax.xlane.f32.xlu0 %v533_v10 }
 0x739   : > { %v1112_v11 = vpop.xlane.xlu0 %534 }
 0x73a   : > { %vm537_vm11 = vcmp.eq.f32.partialorder %v532_v9, %v1112_v11 }
 0x73b   : > { %v538_v12 = vsel %vm537_vm11, %v1076_v13, 16 }
 0x73c   : > { %v539_v14 = vsel %vm463_vm1, %v538_v12, 2147483647 }
 0x73d   : > { %v541_v15 = vshra.s32 %v539_v14, 16  ;;  %v540_v17 = vand.u32 65535, %v539_v14 }
 0x73f   : > { %v543_v16 = vcvt.s32.f32 %v541_v15  ;;  %v542_v20 = vcvt.s32.f32 %v540_v17  ;;  %v490_v17 = vadd.f32 %v1098_v43, %v1091_v22 }
 0x741   : > { %544 = vmin.xlane.f32.xlu0 %v543_v16 }
 0x7ce   : > { %v545_v18 = vpop.xlane.xlu0 %544 }
 0x7cf   : > { %vm546_vm12 = vcmp.eq.f32.partialorder %v543_v16, %v545_v18  ;;  %v551_v19 = vcvt.f32.s32 %v545_v18  ;;  %v513_v18 = vadd.f32 %v1105_v59, %v490_v17 }
 0x7d0   : > { %v547_v21 = vsel %vm546_vm12, %v542_v20, inf }
 0x7d1   : > { %548 = vmin.xlane.f32.xlu1 %v547_v21  ;;  %v552_v24 = vshll.u32 %v551_v19, 16  ;;  %v536_v20 = vadd.f32 %v1112_v11, %v513_v18 }
 0x85e   : > { %v549_v23 = vpop.xlane.xlu1 %548 }
 0x85f   : > { %v550_v25 = vcvt.f32.s32 %v549_v23 }
 0x861   : > { %v553_v26 = vadd.s32 %v552_v24, %v550_v25 }
 0x863   : > { %vm554_vm13 = vcmp.eq.s32.totalorder %v1076_v13, %v553_v26 }
 0x864   : > { %v555_v27 = vsel %vm554_vm13, -inf, %v532_v9 }
 0x865   : > { %v556_v28 = vsel %vm463_vm1, %v555_v27, -inf }
 0x866   : > { %557 = vmax.xlane.f32.xlu0 %v556_v28 }
 0x8f3   : > { %v1119_v29 = vpop.xlane.xlu0 %557 }
 0x8f4   : > { %vm560_vm14 = vcmp.eq.f32.partialorder %v555_v27, %v1119_v29  ;;  %v559_v21 = vadd.f32 %v1119_v29, %v536_v20 }
 0x8f5   : > { %v561_v30 = vsel %vm560_vm14, %v1076_v13, 16 }
 0x8f6   : > { %v562_v31 = vsel %vm463_vm1, %v561_v30, 2147483647 }
 0x8f7   : > { %v564_v32 = vshra.s32 %v562_v31, 16  ;;  %v563_v35 = vand.u32 65535, %v562_v31 }
 0x8f9   : > { %v566_v34 = vcvt.s32.f32 %v564_v32  ;;  %v565_v36 = vcvt.s32.f32 %v563_v35 }
 0x8fb   : > { %567 = vmin.xlane.f32.xlu1 %v566_v34 }
 0x988   : > { %v568_v33 = vpop.xlane.xlu1 %567 }
 0x989   : > { %vm569_vm15 = vcmp.eq.f32.partialorder %v566_v34, %v568_v33  ;;  %v574_v38 = vcvt.f32.s32 %v568_v33 }
 0x98a   : > { %v570_v37 = vsel %vm569_vm15, %v565_v36, inf }
 0x98b   : > { %571 = vmin.xlane.f32.xlu0 %v570_v37  ;;  %v575_v40 = vshll.u32 %v574_v38, 16 }
 0xa18   : > { %v572_v39 = vpop.xlane.xlu0 %571 }
 0xa19   : > { %v573_v41 = vcvt.f32.s32 %v572_v39 }
 0xa1b   : > { %v576_v42 = vadd.s32 %v575_v40, %v573_v41 }
 0xa1d   : > { %vm577_vm0 = vcmp.eq.s32.totalorder %v1076_v13, %v576_v42 }
 0xa1e   : > { %v578_v44 = vsel %vm577_vm0, -inf, %v555_v27 }
 0xa1f   : > { %v579_v45 = vsel %vm463_vm1, %v578_v44, -inf }
 0xa20   : > { %580 = vmax.xlane.f32.xlu1 %v579_v45 }
 0xaad   : > { %v581_v46 = vpop.xlane.xlu1 %580 }
 0xaae   : > { %vm583_vm2 = vcmp.eq.f32.partialorder %v578_v44, %v581_v46  ;;  %v582_v19 = vadd.f32 %v581_v46, %v559_v21 }
 0xaaf   : > { %v584_v47 = vsel %vm583_vm2, %v1076_v13, 16 }
 0xab0   : > { %v585_v48 = vsel %vm463_vm1, %v584_v47, 2147483647 }
 0xab1   : > { %v587_v49 = vshra.s32 %v585_v48, 16  ;;  %v586_v51 = vand.u32 65535, %v585_v48 }
 0xab3   : > { %v589_v50 = vcvt.s32.f32 %v587_v49  ;;  %v588_v53 = vcvt.s32.f32 %v586_v51 }
 0xab5   : > { %590 = vmin.xlane.f32.xlu0 %v589_v50 }
 0xb42   : > { %v591_v52 = vpop.xlane.xlu0 %590 }
 0xb43   : > { %vm592_vm3 = vcmp.eq.f32.partialorder %v589_v50, %v591_v52  ;;  %v597_v55 = vcvt.f32.s32 %v591_v52 }
 0xb44   : > { %v593_v54 = vsel %vm592_vm3, %v588_v53, inf }
 0xb45   : > { %594 = vmin.xlane.f32.xlu1 %v593_v54  ;;  %v598_v57 = vshll.u32 %v597_v55, 16 }
 0xbd2   : > { %v595_v56 = vpop.xlane.xlu1 %594 }
 0xbd3   : > { %v596_v58 = vcvt.f32.s32 %v595_v56 }
 0xbd5   : > { %v599_v60 = vadd.s32 %v598_v57, %v596_v58 }
 0xbd7   : > { %vm600_vm4 = vcmp.eq.s32.totalorder %v1076_v13, %v599_v60 }
 0xbd8   : > { %v601_v61 = vsel %vm600_vm4, -inf, %v578_v44 }
 0xbd9   : > { %v602_v62 = vsel %vm463_vm1, %v601_v61, -inf }
 0xbda   : > { %603 = vmax.xlane.f32.xlu0 %v602_v62 }
 0xc67   : > { %v604_v63 = vpop.xlane.xlu0 %603 }
 0xc68   : > { %vm606_vm5 = vcmp.eq.f32.partialorder %v601_v61, %v604_v63  ;;  %v605_v23 = vadd.f32 %v604_v63, %v582_v19 }
 0xc69   : > { %v607_v0 = vsel %vm606_vm5, %v1076_v13, 16 }
 0xc6a   : > { %v608_v1 = vsel %vm463_vm1, %v607_v0, 2147483647 }
 0xc6b   : > { %v610_v2 = vshra.s32 %v608_v1, 16  ;;  %v609_v4 = vand.u32 65535, %v608_v1 }
 0xc6d   : > { %v612_v3 = vcvt.s32.f32 %v610_v2  ;;  %v611_v6 = vcvt.s32.f32 %v609_v4 }
 0xc6f   : > { %613 = vmin.xlane.f32.xlu1 %v612_v3 }
 0xcfc   : > { %v614_v5 = vpop.xlane.xlu1 %613 }
 0xcfd   : > { %vm615_vm6 = vcmp.eq.f32.partialorder %v612_v3, %v614_v5  ;;  %v620_v8 = vcvt.f32.s32 %v614_v5 }
 0xcfe   : > { %v616_v7 = vsel %vm615_vm6, %v611_v6, inf }
 0xcff   : > { %617 = vmin.xlane.f32.xlu0 %v616_v7  ;;  %v621_v10 = vshll.u32 %v620_v8, 16 }
 0xd8c   : > { %v618_v9 = vpop.xlane.xlu0 %617 }
 0xd8d   : > { %v619_v12 = vcvt.f32.s32 %v618_v9 }
 0xd8f   : > { %v622_v14 = vadd.s32 %v621_v10, %v619_v12 }
 0xd91   : > { %vm623_vm7 = vcmp.eq.s32.totalorder %v1076_v13, %v622_v14 }
 0xd92   : > { %v624_v15 = vsel %vm623_vm7, -inf, %v601_v61 }
 0xd93   : > { %v625_v16 = vsel %vm463_vm1, %v624_v15, -inf }
 0xd94   : > { %626 = vmax.xlane.f32.xlu1 %v625_v16 }
 0xe21   : > { %v627_v24 = vpop.xlane.xlu1 %626 }
 0xe22   : > { %v628_v25 = vadd.f32 %v627_v24, %v605_v23 }
 0xe24   : > { %v629_v13 = vmul.f32 0.125, %v628_v25 }
 0xe26   : > { %631 = vst.msk [vmem:[%s240_s9] sm:$0x1] %vm630_vm8, %v629_v13 }
 0xe27 PF: > { %p16_p11 = scmp.ge.s32.totalorder %s937_s17, 4   ;;  %s1166_s12 = smov %s879_s13 }
 0xe28   : > { %s1167_s13 = smov %s883_s14  ;;  %s1168_s14 = smov %s947_s20 }
 0xe29   : > { %s1169_s15 = smov %s937_s17  ;;  %18 = sbr.rel (!%p16_p11) target bundleno = 5 (0x5), region = 88 }
 0xe30   :  { %649 = vsyncpa [#allocation3], 1 }
 0xe31   :  { %651 = vsyncpa [#allocation3 + $0x1], 1 }
 0xe32   :  { %652 = vsyncpa [#allocation5], 1 }
 0xe33   :  { %654 = vsyncpa [#allocation5 + $0x1], 1 }

</bundles_post_ra>
